<compile_context>
chip_gen: v7x
topology: tpu7x:2x2x1
jax: 0.10.0
libtpu: 0.0.40
codegen_flags: <defaults>
</compile_context>

<pallas_src>
import functools

import jax
import jax.numpy as jnp
from jax import lax
from jax.experimental import pallas as pl
from jax.experimental.pallas import tpu as pltpu


# ----------------------------- small helpers ------------------------------

def _pick_tile(n, candidates):
    """Largest candidate that evenly divides n, else n itself (full dim)."""
    for c in candidates:
        if c <= n and n % c == 0:
            return c
    return n


_VMEM_LIMIT = 32 * 1024 * 1024  # safe scoped-VMEM request on v5e / v6e / v7x


# ------------------- fused (matmul + BN + residual + ReLU) -----------------

def _matmul_bn_act_kernel(*refs, relu, has_res):
    if has_res:
        x_ref, w_ref, scale_ref, bias_ref, res_ref, o_ref, acc_ref = refs
    else:
        x_ref, w_ref, scale_ref, bias_ref, o_ref, acc_ref = refs
        res_ref = None
    k = pl.program_id(2)

    @pl.when(k == 0)
    def _():
        acc_ref[...] = jnp.zeros_like(acc_ref)

    acc_ref[...] += jnp.dot(x_ref[...], w_ref[...],
                            preferred_element_type=jnp.float32)

    @pl.when(k == pl.num_programs(2) - 1)
    def _():
        y = acc_ref[...] * scale_ref[...] + bias_ref[...]
        if res_ref is not None:
            y = y + res_ref[...].astype(jnp.float32)
        if relu:
            y = jnp.maximum(y, 0.0)
        o_ref[...] = y.astype(o_ref.dtype)


@functools.partial(jax.jit, static_argnames=("relu", "out_dtype"))
def matmul_bn_act(x, w, scale, bias, residual=None, *, relu,
                  out_dtype=jnp.bfloat16):
    """(M,K)@(K,N) on the MXU with fused BN affine, optional residual add and ReLU."""
    M, K = x.shape
    _, N = w.shape
    # Tile sizes: sized so double-buffered blocks stay far below 32 MiB scoped VMEM
    # (also safe on v7x's 64 MiB physical VMEM).  Lane dims are multiples of 128 (or full).
    tm = _pick_tile(M, (256, 128, 64, 32, 16, 8))
    tn = _pick_tile(N, (256, 128))
    tk = _pick_tile(K, (512, 384, 256, 128))
    grid = (M // tm, N // tn, K // tk)

    in_specs = [
        pl.BlockSpec((tm, tk), lambda i, j, k: (i, k)),
        pl.BlockSpec((tk, tn), lambda i, j, k: (k, j)),
        pl.BlockSpec((1, tn), lambda i, j, k: (0, j)),
        pl.BlockSpec((1, tn), lambda i, j, k: (0, j)),
    ]
    args = [x, w,
            scale.reshape(1, N).astype(jnp.float32),
            bias.reshape(1, N).astype(jnp.float32)]
    if residual is not None:
        in_specs.append(pl.BlockSpec((tm, tn), lambda i, j, k: (i, j)))
        args.append(residual)

    kernel = functools.partial(_matmul_bn_act_kernel, relu=relu,
                               has_res=residual is not None)
    cost = pl.CostEstimate(flops=2 * M * N * K, transcendentals=0,
                           bytes_accessed=2 * (M * K + K * N + M * N))
    return pl.pallas_call(
        kernel,
        out_shape=jax.ShapeDtypeStruct((M, N), out_dtype),
        grid=grid,
        in_specs=in_specs,
        out_specs=pl.BlockSpec((tm, tn), lambda i, j, k: (i, j)),
        scratch_shapes=[pltpu.VMEM((tm, tn), jnp.float32)],
        compiler_params=pltpu.CompilerParams(
            dimension_semantics=("parallel", "parallel", "arbitrary"),
            vmem_limit_bytes=_VMEM_LIMIT),
        cost_estimate=cost,
    )(*args)


# ------------------ direct (im2col-free) 3x3 / stride-1 conv ----------------

def _conv3x3_s1_kernel(x_ref, w_ref, scale_ref, bias_ref, o_ref, acc_ref, *,
                       cin, wp, tm, relu):
    # x_ref:   (1, Hp*Wp, Cin)   flattened zero-padded input plane (resident per sample)
    # w_ref:   (9*Cin, TCout)    all 9 taps for this Cout tile (resident, constant index)
    # o_ref:   (1, TM, TCout)    output rows in padded-width space (TM = TOH*Wp)
    # acc_ref: (TM, TCout) f32   accumulator scratch
    m = pl.program_id(2)
    base = m * tm
    acc_ref[...] = jnp.zeros_like(acc_ref)
    for ki in range(3):
        for kj in range(3):
            lhs = x_ref[0, pl.ds(base + ki * wp + kj, tm), :]
            wt = w_ref[pl.ds((ki * 3 + kj) * cin, cin), :]
            acc_ref[...] += jnp.dot(lhs, wt, preferred_element_type=jnp.float32)
    y = acc_ref[...] * scale_ref[...] + bias_ref[...]
    if relu:
        y = jnp.maximum(y, 0.0)
    o_ref[...] = y[None].astype(o_ref.dtype)


@functools.partial(jax.jit, static_argnames=("relu",))
def conv3x3_s1_bn_act(x, w, scale, bias, *, relu=True):
    """3x3, stride-1, pad-1 conv + folded BN (+ReLU) without materialised im2col patches.

    The padded plane is flattened to (Hp*Wp, Cin); each of the 9 taps is a contiguous
    shifted slice of that flat buffer, so the kernel accumulates 9 small matmuls directly
    from the resident VMEM copy of the activation (the 2 "wrap-around" columns per row are
    garbage and dropped afterwards).
    """
    n, h, wd, cin = x.shape
    cout = w.shape[1]
    oh, ow = h, wd
    wp = wd + 2
    # top pad 1, bottom pad 2 (extra row keeps every tap read of the flat buffer in
    # bounds), left/right pad 1.
    xp = jnp.pad(x, ((0, 0), (1, 2), (1, 1), (0, 0)))
    xflat = xp.reshape(n, (h + 3) * wp, cin)

    toh = oh if oh <= 32 else _pick_tile(oh, (32, 16, 8))
    tm = toh * wp
    m_full = oh * wp
    tcout = _pick_tile(cout, (256, 128))
    grid = (n, cout // tcout, oh // toh)  # M innermost: weight tile stays resident per j

    kernel = functools.partial(_conv3x3_s1_kernel, cin=cin, wp=wp, tm=tm, relu=relu)
    cost = pl.CostEstimate(
        flops=2 * n * m_full * 9 * cin * cout, transcendentals=0,
        bytes_accessed=2 * (n * (h + 3) * wp * cin + 9 * cin * cout + n * m_full * cout))
    out = pl.pallas_call(
        kernel,
        out_shape=jax.ShapeDtypeStruct((n, m_full, cout), jnp.bfloat16),
        grid=grid,
        in_specs=[
            pl.BlockSpec((1, (h + 3) * wp, cin), lambda b, j, m: (b, 0, 0)),
            pl.BlockSpec((9 * cin, tcout), lambda b, j, m: (0, j)),
            pl.BlockSpec((1, tcout), lambda b, j, m: (0, j)),
            pl.BlockSpec((1, tcout), lambda b, j, m: (0, j)),
        ],
        out_specs=pl.BlockSpec((1, tm, tcout), lambda b, j, m: (b, m, j)),
        scratch_shapes=[pltpu.VMEM((tm, tcout), jnp.float32)],
        compiler_params=pltpu.CompilerParams(
            dimension_semantics=("parallel", "parallel", "parallel"),
            vmem_limit_bytes=_VMEM_LIMIT),
        cost_estimate=cost,
    )(xflat, w,
      scale.reshape(1, cout).astype(jnp.float32),
      bias.reshape(1, cout).astype(jnp.float32))
    # Drop the 2 wrap-around columns produced by computing in padded-width space.
    return out.reshape(n, oh, wp, cout)[:, :, :ow, :]


# ------------------------------- max pool -----------------------------------

def _max9_kernel(*refs):
    out_ref = refs[-1]
    acc = refs[0][...]
    for r in refs[1:-1]:
        acc = jnp.maximum(acc, r[...])
    out_ref[...] = acc


@jax.jit
def maxpool_3x3_s2(x):
    n, h, w, c = x.shape
    ksz, stride, pad = 3, 2, 1
    oh = (h + 2 * pad - ksz) // stride + 1
    ow = (w + 2 * pad - ksz) // stride + 1
    xp = jnp.pad(x, ((0, 0), (pad, pad), (pad, pad), (0, 0)),
                 constant_values=-jnp.inf)
    views = []
    for i in range(ksz):
        for j in range(ksz):
            sl = lax.slice(
                xp, (0, i, j, 0),
                (n, i + (oh - 1) * stride + 1, j + (ow - 1) * stride + 1, c),
                (1, stride, stride, 1))
            views.append(sl)
    total = n * oh * ow * c
    if total % 128 == 0:
        rows, cols = total // 128, 128      # lane-dense layout -> unmasked stores
    else:
        rows, cols = n * oh * ow, c
    views = [v.reshape(rows, cols) for v in views]
    tr = _pick_tile(rows, (2048, 1024, 512, 256, 128, 64, 32, 16, 8))
    out = pl.pallas_call(
        _max9_kernel,
        out_shape=jax.ShapeDtypeStruct((rows, cols), x.dtype),
        grid=(rows // tr,),
        in_specs=[pl.BlockSpec((tr, cols), lambda i: (i, 0)) for _ in range(9)],
        out_specs=pl.BlockSpec((tr, cols), lambda i: (i, 0)),
        compiler_params=pltpu.CompilerParams(
            dimension_semantics=("parallel",),
            vmem_limit_bytes=_VMEM_LIMIT),
    )(*views)
    return out.reshape(n, oh, ow, c)


# ------------------------- global avg pool + Linear --------------------------

def _avgpool_fc_kernel(x_ref, w_ref, b_ref, o_ref, *, inv_hw):
    x = x_ref[...].astype(jnp.float32)            # (TB, HW, C)
    pooled = jnp.sum(x, axis=1) * inv_hw          # mean as sum * 1/HW
    o_ref[...] = (jnp.dot(pooled, w_ref[...], preferred_element_type=jnp.float32)
                  + b_ref[...])


@jax.jit
def avgpool_linear(x, w, b):
    # x: (N, HW, C) bf16; w: (C, NCP) f32 with classes padded to a lane multiple.
    n, hw, c = x.shape
    ncp = w.shape[1]
    tb = _pick_tile(n, (8,))
    kernel = functools.partial(_avgpool_fc_kernel, inv_hw=1.0 / hw)
    return pl.pallas_call(
        kernel,
        out_shape=jax.ShapeDtypeStruct((n, ncp), jnp.float32),
        grid=(n // tb,),
        in_specs=[
            pl.BlockSpec((tb, hw, c), lambda i: (i, 0, 0)),
            pl.BlockSpec((c, ncp), lambda i: (0, 0)),
            pl.BlockSpec((1, ncp), lambda i: (0, 0)),
        ],
        out_specs=pl.BlockSpec((tb, ncp), lambda i: (i, 0)),
        compiler_params=pltpu.CompilerParams(
            dimension_semantics=("parallel",),
            vmem_limit_bytes=_VMEM_LIMIT),
    )(x, w, b.reshape(1, ncp))


# ----------------------- plain-JAX glue (im2col etc.) ------------------------

def _im2col(x, kh, kw, stride, pad):
    # x: (N, H, W, C) -> ((N*OH*OW, KH*KW*C), OH, OW)
    n, h, w, c = x.shape
    if pad > 0:
        x = jnp.pad(x, ((0, 0), (pad, pad), (pad, pad), (0, 0)))
    oh = (h + 2 * pad - kh) // stride + 1
    ow = (w + 2 * pad - kw) // stride + 1
    if kh == 1 and kw == 1 and stride == 1:
        return x.reshape(n * oh * ow, c), oh, ow       # pure reshape, no copy
    cols = []
    for i in range(kh):
        for j in range(kw):
            sl = lax.slice(
                x, (0, i, j, 0),
                (n, i + (oh - 1) * stride + 1, j + (ow - 1) * stride + 1, c),
                (1, stride, stride, 1))
            cols.append(sl)
    patches = jnp.concatenate(cols, axis=-1)
    return patches.reshape(n * oh * ow, kh * kw * c), oh, ow


@functools.partial(jax.jit, static_argnames=("kh", "kw", "stride", "pad", "relu"))
def conv_im2col_bn_act(x, w, scale, bias, residual=None, *,
                       kh, kw, stride, pad, relu):
    n = x.shape[0]
    patches, oh, ow = _im2col(x, kh, kw, stride, pad)
    K = w.shape[0]
    if K > 128 and K % 128 != 0:
        # Lane-align the contraction dim (conv1: 147 -> 256) with zero padding.
        kpad = ((K + 127) // 128) * 128
        patches = jnp.pad(patches, ((0, 0), (0, kpad - K)))
        w = jnp.pad(w, ((0, kpad - K), (0, 0)))
    res2d = residual.reshape(n * oh * ow, -1) if residual is not None else None
    y = matmul_bn_act(patches, w, scale, bias, res2d, relu=relu)
    return y.reshape(n, oh, ow, y.shape[-1])


def conv_bn_act(x, p, *, stride, relu, residual=None):
    """Conv2d + folded eval-mode BN + optional fused residual-add + ReLU."""
    if p["kh"] == 3 and stride == 1 and residual is None:
        return conv3x3_s1_bn_act(x, p["w"], p["scale"], p["bias"], relu=relu)
    # TODO(synk): the three stride-2 3x3 convs and the 7x7 stem still use a materialised
    #             im2col; they could reuse the direct kernel with a strided/phase-split
    #             input to remove that HBM expansion as well.
    return conv_im2col_bn_act(x, p["w"], p["scale"], p["bias"], residual,
                              kh=p["kh"], kw=p["kw"], stride=stride,
                              pad=p["pad"], relu=relu)


# --------------------------- parameter construction -------------------------

def make_conv_bn(key, cin, cout, kh, kw, pad):
    k_w, k_g, k_b = jax.random.split(key, 3)
    fan_in = kh * kw * cin
    w = (jax.random.normal(k_w, (kh * kw * cin, cout), jnp.float32)
         * (2.0 / fan_in) ** 0.5).astype(jnp.bfloat16)     # bf16 MXU operands
    gamma = 1.0 + 0.1 * jax.random.normal(k_g, (cout,), jnp.float32)
    beta = 0.1 * jax.random.normal(k_b, (cout,), jnp.float32)
    running_mean = jnp.zeros((cout,), jnp.float32)
    running_var = jnp.ones((cout,), jnp.float32)
    eps = 1e-5
    scale = gamma / jnp.sqrt(running_var + eps)   # eval-mode BN folded into the epilogue
    bias = beta - running_mean * scale
    return dict(w=w, scale=scale, bias=bias, kh=kh, kw=kw, pad=pad)


def make_bottleneck(key, cin, width, stride, has_downsample):
    keys = jax.random.split(key, 4)
    p = dict(
        conv1=make_conv_bn(keys[0], cin, width, 1, 1, 0),
        conv2=make_conv_bn(keys[1], width, width, 3, 3, 1),
        conv3=make_conv_bn(keys[2], width, width * 4, 1, 1, 0),
        stride=stride,
    )
    if has_downsample:
        p["downsample"] = make_conv_bn(keys[3], cin, width * 4, 1, 1, 0)
    return p


def make_layer(key, cin, width, blocks, stride):
    keys = jax.random.split(key, blocks)
    params = [make_bottleneck(keys[0], cin, width, stride, True)]
    for i in range(1, blocks):
        params.append(make_bottleneck(keys[i], width * 4, width, 1, False))
    return params


def make_model_params(key, num_classes):
    keys = jax.random.split(key, 7)
    ncp = ((num_classes + 127) // 128) * 128
    fc_w = jax.random.normal(keys[5], (2048, num_classes), jnp.float32) * (1.0 / 2048) ** 0.5
    fc_b = 0.01 * jax.random.normal(keys[6], (num_classes,), jnp.float32)
    return dict(
        conv1=make_conv_bn(keys[0], 3, 64, 7, 7, 3),
        layer1=make_layer(keys[1], 64, 64, 3, 1),
        layer2=make_layer(keys[2], 256, 128, 4, 2),
        layer3=make_layer(keys[3], 512, 256, 6, 2),
        layer4=make_layer(keys[4], 1024, 512, 3, 2),
        fc_w_pad=jnp.pad(fc_w, ((0, 0), (0, ncp - num_classes))),  # lane-dense head
        fc_b_pad=jnp.pad(fc_b, ((0, ncp - num_classes),)),
        temperature=jnp.ones((1,), jnp.float32),
        num_classes=jnp.float32(num_classes),
        num_classes_int=num_classes,
    )


# --------------------------------- forward ----------------------------------

def bottleneck_forward(x, p):
    out = conv_bn_act(x, p["conv1"], stride=1, relu=True)
    out = conv_bn_act(out, p["conv2"], stride=p["stride"], relu=True)
    if "downsample" in p:
        identity = conv_bn_act(x, p["downsample"], stride=p["stride"], relu=False)
    else:
        identity = x
    # conv3 + BN with the residual add + ReLU fused into the matmul epilogue.
    return conv_bn_act(out, p["conv3"], stride=1, relu=True, residual=identity)


def classification_filter_forward(image_nchw, params):
    # image: (N, C, H, W) like the PyTorch module; converted to NHWC bf16 for the kernels.
    x = jnp.transpose(image_nchw, (0, 2, 3, 1)).astype(jnp.bfloat16)
    x = conv_bn_act(x, params["conv1"], stride=2, relu=True)   # conv1 + bn1 + relu
    x = maxpool_3x3_s2(x)                                      # maxpool
    for layer in ("layer1", "layer2", "layer3", "layer4"):
        for block in params[layer]:
            x = bottleneck_forward(x, block)
    n, h, w, c = x.shape
    logits_padded = avgpool_linear(x.reshape(n, h * w, c),
                                   params["fc_w_pad"], params["fc_b_pad"])
    return logits_padded[:, :params["num_classes_int"]]


def temperature_scale(logits, params):
    # Not part of forward(); kept for parity with the PyTorch module.
    return logits / params["temperature"][:, None]


# ----------------------------------- main ------------------------------------

if __name__ == "__main__":
    num_classes = 10
    key = jax.random.PRNGKey(0)
    k_params, k_img = jax.random.split(key)
    params = make_model_params(k_params, num_classes)
    image = jax.random.normal(k_img, (2, 3, 32, 32), jnp.float32)  # NCHW, like PyTorch

    logits = classification_filter_forward(image, params)
    logits = jax.block_until_ready(logits)

    assert logits.shape == (2, num_classes)
    assert bool(jnp.all(jnp.isfinite(logits)))
    print("KERNEL_OK")
</pallas_src>

<mosaic_0001>
module attributes {stable_mosaic.version = 11 : i64} {
  func.func @_matmul_bn_act_kernel(%arg0: i32, %arg1: i32, %arg2: i32, %arg3: memref<256x256xbf16, #tpu.memory_space<vmem>>, %arg4: memref<256x64xbf16, #tpu.memory_space<vmem>>, %arg5: memref<1x64xf32, #tpu.memory_space<vmem>>, %arg6: memref<1x64xf32, #tpu.memory_space<vmem>>, %arg7: memref<256x64xbf16, #tpu.memory_space<vmem>>, %arg8: memref<256x64xf32, #tpu.memory_space<vmem>>) attributes {dimension_semantics = [#tpu.dimension_semantics<parallel>, #tpu.dimension_semantics<parallel>, #tpu.dimension_semantics<arbitrary>], iteration_bounds = array<i64: 2, 1, 1>, scalar_prefetch = 0 : i64, scratch_operands = 1 : i64, tpu.core_type = #tpu.core_type<tc>, window_params = [{transform_indices = @transform_0, window_bounds = array<i64: 256, 256>}, {transform_indices = @transform_1, window_bounds = array<i64: 256, 64>}, {transform_indices = @transform_2, window_bounds = array<i64: 1, 64>}, {transform_indices = @transform_3, window_bounds = array<i64: 1, 64>}, {transform_indices = @transform_4, window_bounds = array<i64: 256, 64>}]} {
    %c0_i32 = arith.constant 0 : i32
    %0 = arith.cmpi eq, %arg2, %c0_i32 : i32
    %1 = arith.extui %0 : i1 to i32
    %c0_i32_0 = arith.constant 0 : i32
    %2 = arith.cmpi ne, %1, %c0_i32_0 : i32
    scf.if %2 {
      %cst_10 = arith.constant 0.000000e+00 : f32
      %12 = vector.broadcast %cst_10 : f32 to vector<256x64xf32>
      %c0_11 = arith.constant 0 : index
      %c0_12 = arith.constant 0 : index
      %13 = vector.load %arg8[%c0_11, %c0_12] : memref<256x64xf32, #tpu.memory_space<vmem>>, vector<256x64xf32>
      tpu.vector_store %arg8[%c0_11, %c0_12], %12 {strides = array<i32>} : memref<256x64xf32, #tpu.memory_space<vmem>>, vector<256x64xf32>,
    } else {
    }
    %c0 = arith.constant 0 : index
    %c0_1 = arith.constant 0 : index
    %3 = vector.load %arg8[%c0, %c0_1] : memref<256x64xf32, #tpu.memory_space<vmem>>, vector<256x64xf32>
    %c0_2 = arith.constant 0 : index
    %c0_3 = arith.constant 0 : index
    %4 = vector.load %arg3[%c0_2, %c0_3] : memref<256x256xbf16, #tpu.memory_space<vmem>>, vector<256x256xbf16>
    %c0_4 = arith.constant 0 : index
    %c0_5 = arith.constant 0 : index
    %5 = vector.load %arg4[%c0_4, %c0_5] : memref<256x64xbf16, #tpu.memory_space<vmem>>, vector<256x64xbf16>
    %cst = arith.constant dense<0.000000e+00> : vector<256x64xf32>
    %6 = tpu.matmul %4, %5, %cst {dimension_numbers = #tpu.dot_dimension_numbers<[1], [0], [0], [1], [0, 0, 1, 1], [], []>} : vector<256x256xbf16>, vector<256x64xbf16>, vector<256x64xf32> -> vector<256x64xf32>
    %7 = arith.addf %3, %6 : vector<256x64xf32>
    %c0_6 = arith.constant 0 : index
    %c0_7 = arith.constant 0 : index
    %8 = vector.load %arg8[%c0_6, %c0_7] : memref<256x64xf32, #tpu.memory_space<vmem>>, vector<256x64xf32>
    tpu.vector_store %arg8[%c0_6, %c0_7], %7 {strides = array<i32>} : memref<256x64xf32, #tpu.memory_space<vmem>>, vector<256x64xf32>,
    %c0_i32_8 = arith.constant 0 : i32
    %9 = arith.cmpi eq, %arg2, %c0_i32_8 : i32
    %10 = arith.extui %9 : i1 to i32
    %c0_i32_9 = arith.constant 0 : i32
    %11 = arith.cmpi ne, %10, %c0_i32_9 : i32
    scf.if %11 {
      %c0_10 = arith.constant 0 : index
      %c0_11 = arith.constant 0 : index
      %12 = vector.load %arg8[%c0_10, %c0_11] : memref<256x64xf32, #tpu.memory_space<vmem>>, vector<256x64xf32>
      %c0_12 = arith.constant 0 : index
      %c0_13 = arith.constant 0 : index
      %13 = vector.load %arg5[%c0_12, %c0_13] : memref<1x64xf32, #tpu.memory_space<vmem>>, vector<1x64xf32>
      %14 = vector.broadcast %13 : vector<1x64xf32> to vector<256x64xf32>
      %15 = arith.mulf %12, %14 : vector<256x64xf32>
      %c0_14 = arith.constant 0 : index
      %c0_15 = arith.constant 0 : index
      %16 = vector.load %arg6[%c0_14, %c0_15] : memref<1x64xf32, #tpu.memory_space<vmem>>, vector<1x64xf32>
      %17 = vector.broadcast %16 : vector<1x64xf32> to vector<256x64xf32>
      %18 = arith.addf %15, %17 : vector<256x64xf32>
      %cst_16 = arith.constant 0.000000e+00 : f32
      %19 = vector.broadcast %cst_16 : f32 to vector<256x64xf32>
      %20 = arith.maximumf %18, %19 : vector<256x64xf32>
      %21 = arith.truncf %20 : vector<256x64xf32> to vector<256x64xbf16>
      %c0_17 = arith.constant 0 : index
      %c0_18 = arith.constant 0 : index
      %22 = vector.load %arg7[%c0_17, %c0_18] : memref<256x64xbf16, #tpu.memory_space<vmem>>, vector<256x64xbf16>
      tpu.vector_store %arg7[%c0_17, %c0_18], %21 {strides = array<i32>} : memref<256x64xbf16, #tpu.memory_space<vmem>>, vector<256x64xbf16>,
    } else {
    }
    return
  }
  func.func @transform_0(%arg0: i32, %arg1: i32, %arg2: i32) -> (i32, i32) {
    %c0_i32 = arith.constant 0 : i32
    return %arg0, %arg2 : i32, i32
  }
  func.func @transform_1(%arg0: i32, %arg1: i32, %arg2: i32) -> (i32, i32) {
    %c0_i32 = arith.constant 0 : i32
    return %arg2, %arg1 : i32, i32
  }
  func.func @transform_2(%arg0: i32, %arg1: i32, %arg2: i32) -> (i32, i32) {
    %c0_i32 = arith.constant 0 : i32
    %c0_i32_0 = arith.constant 0 : i32
    return %c0_i32, %arg1 : i32, i32
  }
  func.func @transform_3(%arg0: i32, %arg1: i32, %arg2: i32) -> (i32, i32) {
    %c0_i32 = arith.constant 0 : i32
    %c0_i32_0 = arith.constant 0 : i32
    return %c0_i32, %arg1 : i32, i32
  }
  func.func @transform_4(%arg0: i32, %arg1: i32, %arg2: i32) -> (i32, i32) {
    %c0_i32 = arith.constant 0 : i32
    return %arg0, %arg1 : i32, i32
  }
}

</mosaic_0001>

<bundles_post_ra>
// kernel: matmul_bn_act.1
= control target key start
LH: loop header
LB: loop body
LE: loop exit
PB: predicated region body
PF: predicated region fallthrough
CT: control target
= control target key end

     0   :  { %9 = vsyncpa [#allocation4], 0  ;;  %s2282_s0 = inlined_call_operand.hbm [shape: bf16[512,256], index: 0, kind: input, shape index: {}]   ;;  %s2283_s1 = inlined_call_operand.vmem [shape: bf16[256,64], index: 1, kind: input, shape index: {}]   ;;  %s2284_s2 = inlined_call_operand.vmem [shape: f32[1,64], index: 2, kind: input, shape index: {}]   ;;  %s2285_s3 = inlined_call_operand.vmem [shape: f32[1,64], index: 3, kind: input, shape index: {}]   ;;  %s2286_s4 = inlined_call_operand.vmem [shape: bf16[512,64], index: 4, kind: output, shape index: {}]  }
   0x1   :  { %11 = vsyncpa [#allocation4 + $0x1], 0  ;;  %s1864_s15 = smov 0   ;;  %s1866_s16 = smov 0  }
   0x2   :  { %s1868_s17 = smov 0   ;;  %s1870_s18 = smov 0  }
   0x3   :  { %s1872_s19 = smov 0   ;;  %s1874_s20 = smov 0  }
   0x4 LB: > { %s1370_s21 = sadd.s32 4294967295, %s1833_s20   ;;  %s36_s22 = sadd.s32 1, %s1829_s19  ;;  %s1833_s20 = sphi %s1874_s20, %s17_s20   ;;  %s1829_s19 = sphi %s1872_s19, %s2295_s19   ;;  %s1825_s18 = sphi %s1870_s18, %s2294_s18   ;;  %s1821_s17 = sphi %s1868_s17, %s2293_s17   ;;  %s1817_s16 = sphi %s1866_s16, %s2292_s16   ;;  %s1813_s15 = sphi %s1864_s15, %s2291_s15  }
   0x5   : > { %p38_p0 = scmp.ge.s32.totalorder %s36_s22, 2  ;;  %s45_s23 = sadd.s32 1, %s1821_s17 }
   0x6   : > { %p52_p1 = scmp.ne.s32.totalorder %s1821_s17, %s1817_s16  ;;  %p53_p2 = scmp.eq.s32.totalorder %s1833_s20, 0 }
   0x7   : > { %s2297_s22 = smov (%p38_p0, %s36_s22), 0  ;;  %p58_p4 = scmp.ne.s32.totalorder %s1817_s16, %s1813_s15 }
   0x8   : > { %p1900_p3 = por %p53_p2, %p52_p1  ;;  %s40_s25 = ssub.s32 %s1829_s19, %s2297_s22 }
   0x9   : > { %p59_p5 = scmp.eq.s32.totalorder %s1370_s21, 0  ;;  %p43_p6 = scmp.eq.s32.totalorder %s40_s25, 0 }
   0xa   : > { %p1637_p8 = scmp.lt.s32.totalorder %s1833_s20, 2  ;;  %s214_s28 = sand.u32 1, %s1821_s17  }
   0xb   : > { %p1907_p7 = por %p59_p5, %p58_p4  ;;  %s1470_s29 = sshll.u32 %s1829_s19, 12 }
   0xc   : > { %s1913_s27 = scalar_select %p43_p6, %s1821_s17, %s45_s23  }
   0xd   : > { %s1377_s30 = sshll.u32 %s214_s28, 8  ;;  %s1920_s7 = scalar_lea.hbm %s2282_s0, %s1470_s29 }
   0xe   : > { %s218_s8 = scalar_lea.vmem [#allocation3], %s1377_s30  ;;  %p1924_p9 = pnand %p1637_p8, %p1900_p3 }
   0xf   : > { %s228_s9 = sshll.u32 %s218_s8, 4  ;;  %s1930_s11 = scalar_lea.sflag [#allocation4], %s214_s28  ;;  %s1928_s9 = int_to_ptr.vmem [resolvable:$true] %s228_s9 }
  0x10   : > { %s1753_s12 = scalar_lea.hbm %s1920_s7, 4096  ;;  %p1755_p11 = pneg %p1924_p9 }
  0x11   : > { %p1754_p10 = scmp.ne.s32.totalorder %s1920_s7, %s1753_s12  ;;  %s1758_s15 = scalar_lea.hbm %s2282_s0, 8192 }
  0x12   : > { %p1759_p0 = scmp.lt.u32.totalorder %s1920_s7, %s2282_s0  ;;  %p1760_p1 = scmp.lt.u32.totalorder %s1758_s15, %s1753_s12 }
  0x13   : > { %p1756_p12 = pnand %p1755_p11, %p1754_p10  ;;  %p1762_p3 = scmp.lt.u32.totalorder %s1753_s12, %s1920_s7 }
  0x14   : > { %p1761_p2 = por %p1760_p1, %p1759_p0 }
  0x15   : > { %p1757_p13 = pneg %p1756_p12 }
  0x16   : > { %p1763_p4 = por %p1762_p3, %p1761_p2 }
  0x18   : > { %p1764_p5 = pnand %p1763_p4, %p1757_p13 }
  0x1a   : > { %1767 = shalt.err (!%p1764_p5)
}
  0x1b   : > { %s1768_s24 = scalar_lea.vmem %s1928_s9, 4096  ;;  %s1835_s25 = smov [#allocation3]  }
  0x1c   : > { %p1769_p6 = scmp.ne.s32.totalorder %s1928_s9, %s1768_s24  ;;  %s1773_s28 = sshll.u32 %s1835_s25, 4  ;;  %s1774_s28 = int_to_ptr.vmem [resolvable:$false] %s1773_s28 }
  0x1d   : > { %s1775_s29 = scalar_lea.vmem %s1774_s28, 8192  ;;  %p1776_p12 = scmp.lt.s32.totalorder %s1928_s9, %s1774_s28 }
  0x1e   : > { %p1771_p8 = pnand %p1769_p6, %p1755_p11  ;;  %p1777_p0 = scmp.lt.s32.totalorder %s1775_s29, %s1768_s24 }
  0x20   : > { %p1772_p10 = pneg %p1771_p8  ;;  %p1778_p1 = por %p1777_p0, %p1776_p12 }
  0x22   : > { %p1779_p2 = pnand %p1778_p1, %p1772_p10 }
  0x24   : > { %1782 = shalt.err (!%p1779_p2)
}
  0x25   : > { %s1836_s30 = smov 128   ;;  %s1837_s5 = smov 8  }
  0x26   : > { %1636 = dma.hbm_to_vmem [thread:$0]  (!%p1924_p9), %s1920_s7, 4096, %s1928_s9, %s1930_s11, %s1836_s30, %s1836_s30, %s1837_s5  }
  0x27   : > { %p1381_p11 = scmp.ge.s32.totalorder %s1833_s20, 1  ;;  %p236_p13 = scmp.lt.s32.totalorder %s1833_s20, 3 }
  0x29   : > { %p237_p3 = pnand %p1381_p11, %p236_p13 }
  0x2a   : > { %s242_s6 = sand.u32 (!%p237_p3), 1, %s1817_s16  }
  0x2b   : > { %240 = sbr.rel (%p237_p3) target bundleno = 378 (0x17a), region = 36  ;;  %s1382_s8 = sshll.u32 (!%p237_p3), %s242_s6, 8 }
  0x2c   : > { %s243_s12 = scalar_lea.sflag (!%p237_p3), [#allocation4], %s242_s6  ;;  %s1961_s13 = scalar_lea.vmem (!%p237_p3), [#allocation3], %s1382_s8 }
  0x32   : > { %1808 = dma.done.wait (%p1907_p7), %s243_s12, 4096  }
  0x33   : > { %1810 = vsyncadd (%p1907_p7), %s243_s12, 4294963200  ;;  %v1689_v0 = vld [vmem:[%s2283_s1 + $0x40] sm:$0xff]   ;;  %v1691_v2 = vld [vmem:[%s2283_s1 + $0x48] sm:$0xff]   ;;  %vm319_vm0 = vcmask 523264   ;;  %v1838_v48 = vmov 0.0   ;;  %vm1203_vm1 = vcmask 519168  }
  0x34   : > { %v1690_v1 = vld [vmem:[%s2283_s1] sm:$0xff]   ;;  %1503 = vmatprep.subr.bf16.mxu0 %v1689_v0  ;;  %1615 = vmatprep.subr.bf16.mxu1 %v1689_v0  ;;  %v1692_v3 = vld [vmem:[%s2283_s1 + $0x8] sm:$0xff]   ;;  %v1693_v4 = vld [vmem:[%s2283_s1 + $0x50] sm:$0xff]   ;;  %320 = vst.msk [vmem:[#allocation2] sm:$0xff] %vm319_vm0, %v1838_v48 }
  0x35   : > { %1504 = vmatpush3.bf16.msra.mxu0 %v1690_v1  ;;  %1623 = vmatpush3.bf16.msra.mxu1 %v1690_v1  ;;  %v1694_v5 = vld [vmem:[%s2283_s1 + $0x10] sm:$0xff]   ;;  %v1695_v6 = vld [vmem:[%s2283_s1 + $0x58] sm:$0xff]   ;;  %v1697_v8 = vld [vmem:[%s2283_s1 + $0x60] sm:$0xff]   ;;  %321 = vst.msk [vmem:[#allocation2 + $0x8] sm:$0xff] %vm319_vm0, %v1838_v48 }
  0x36   : > { %1505 = vmatprep.subr.bf16.mxu0 %v1691_v2  ;;  %1616 = vmatprep.subr.bf16.mxu1 %v1691_v2  ;;  %v1696_v7 = vld [vmem:[%s2283_s1 + $0x18] sm:$0xff]   ;;  %v1698_v9 = vld [vmem:[%s2283_s1 + $0x20] sm:$0xff]   ;;  %v1699_v10 = vld [vmem:[%s2283_s1 + $0x68] sm:$0xff]   ;;  %322 = vst.msk [vmem:[#allocation2 + $0x10] sm:$0xff] %vm319_vm0, %v1838_v48 }
  0x37   : > { %v1707_v11 = vld [vmem:[%s1961_s13 + $0x4] ss:$8 sps:$4 sm:$0xff]   ;;  %v1701_v14 = vld [vmem:[%s2283_s1 + $0x70] sm:$0xff]   ;;  %v1703_v16 = vld [vmem:[%s2283_s1 + $0x78] sm:$0xff]   ;;  %323 = vst.msk [vmem:[#allocation2 + $0x18] sm:$0xff] %vm319_vm0, %v1838_v48 }
  0x38   : > { %v1710_v12 = vld [vmem:[%s1961_s13 + $0x84] ss:$8 sps:$4 sm:$0xff]   ;;  %736 = vmatprep.mubr.bf16.mxu0 %v1707_v11  ;;  %v1702_v15 = vld [vmem:[%s2283_s1 + $0x30] sm:$0xff]   ;;  %v1704_v17 = vld [vmem:[%s2283_s1 + $0x38] sm:$0xff]   ;;  %324 = vst.msk [vmem:[#allocation2 + $0x20] sm:$0xff] %vm319_vm0, %v1838_v48 }
  0x39   : > { %1506 = vmatpush3.bf16.msra.mxu0 %v1692_v3  ;;  %1624 = vmatpush3.bf16.msra.mxu1 %v1692_v3  ;;  %v1700_v13 = vld [vmem:[%s2283_s1 + $0x28] sm:$0xff]   ;;  %v1711_v20 = vld [vmem:[%s1961_s13 + $0x14] ss:$8 sps:$4 sm:$0xff]   ;;  %v1715_v22 = vld [vmem:[%s1961_s13 + $0x10] ss:$8 sps:$4 sm:$0xff]   ;;  %325 = vst.msk [vmem:[#allocation2 + $0x28] sm:$0xff] %vm319_vm0, %v1838_v48 }
  0x3a   : > { %1507 = vmatprep.subr.bf16.mxu0 %v1693_v4  ;;  %1617 = vmatprep.subr.bf16.mxu1 %v1693_v4  ;;  %v1705_v18 = vld [vmem:[%s1961_s13] ss:$8 sps:$4 sm:$0xff]   ;;  %v1713_v21 = vld [vmem:[%s1961_s13 + $0x94] ss:$8 sps:$4 sm:$0xff]   ;;  %v1716_v23 = vld [vmem:[%s1961_s13 + $0x90] ss:$8 sps:$4 sm:$0xff]  }
  0x3b   : > { %800 = vmatprep.mubr.bf16.mxu1 %v1710_v12  ;;  %v1708_v19 = vld [vmem:[%s1961_s13 + $0x80] ss:$8 sps:$4 sm:$0xff]   ;;  %v1717_v24 = vld [vmem:[%s1961_s13 + $0x24] ss:$8 sps:$4 sm:$0xff]   ;;  %v1723_v28 = vld [vmem:[%s1961_s13 + $0x34] ss:$8 sps:$4 sm:$0xff]  }
  0x3c   : > { %v1719_v25 = vld [vmem:[%s1961_s13 + $0xa4] ss:$8 sps:$4 sm:$0xff]   ;;  %v1721_v26 = vld [vmem:[%s1961_s13 + $0x20] ss:$8 sps:$4 sm:$0xff]   ;;  %v1725_v29 = vld [vmem:[%s1961_s13 + $0xb4] ss:$8 sps:$4 sm:$0xff]  }
  0x3d   : > { %1508 = vmatpush3.bf16.msra.mxu0 %v1694_v5  ;;  %1625 = vmatpush3.bf16.msra.mxu1 %v1694_v5  ;;  %v1722_v27 = vld [vmem:[%s1961_s13 + $0xa0] ss:$8 sps:$4 sm:$0xff]   ;;  %v1727_v30 = vld [vmem:[%s1961_s13 + $0x30] ss:$8 sps:$4 sm:$0xff]   ;;  %v1729_v32 = vld [vmem:[%s1961_s13 + $0x44] ss:$8 sps:$4 sm:$0xff]  }
  0x3e   : > { %1509 = vmatprep.subr.bf16.mxu0 %v1695_v6  ;;  %1618 = vmatprep.subr.bf16.mxu1 %v1695_v6  ;;  %v1728_v31 = vld [vmem:[%s1961_s13 + $0xb0] ss:$8 sps:$4 sm:$0xff]   ;;  %v1731_v33 = vld [vmem:[%s1961_s13 + $0xc4] ss:$8 sps:$4 sm:$0xff]   ;;  %v1733_v34 = vld [vmem:[%s1961_s13 + $0x40] ss:$8 sps:$4 sm:$0xff]  }
  0x3f   : > { %v1734_v35 = vld [vmem:[%s1961_s13 + $0xc0] ss:$8 sps:$4 sm:$0xff]   ;;  %v1735_v36 = vld [vmem:[%s1961_s13 + $0x54] ss:$8 sps:$4 sm:$0xff]   ;;  %v1739_v38 = vld [vmem:[%s1961_s13 + $0x50] ss:$8 sps:$4 sm:$0xff]  }
  0x40   : > { %v1737_v37 = vld [vmem:[%s1961_s13 + $0xd4] ss:$8 sps:$4 sm:$0xff]   ;;  %v1740_v39 = vld [vmem:[%s1961_s13 + $0xd0] ss:$8 sps:$4 sm:$0xff]   ;;  %v1741_v40 = vld [vmem:[%s1961_s13 + $0x64] ss:$8 sps:$4 sm:$0xff]  }
  0x41   : > { %1510 = vmatpush3.bf16.msra.mxu0 %v1696_v7  ;;  %1626 = vmatpush3.bf16.msra.mxu1 %v1696_v7  ;;  %v1743_v41 = vld [vmem:[%s1961_s13 + $0xe4] ss:$8 sps:$4 sm:$0xff]   ;;  %v1745_v42 = vld [vmem:[%s1961_s13 + $0x60] ss:$8 sps:$4 sm:$0xff]   ;;  %v1747_v44 = vld [vmem:[%s1961_s13 + $0x74] ss:$8 sps:$4 sm:$0xff]  }
  0x42   : > { %1511 = vmatprep.subr.bf16.mxu0 %v1697_v8  ;;  %1619 = vmatprep.subr.bf16.mxu1 %v1697_v8  ;;  %v1746_v43 = vld [vmem:[%s1961_s13 + $0xe0] ss:$8 sps:$4 sm:$0xff]   ;;  %v1749_v45 = vld [vmem:[%s1961_s13 + $0xf4] ss:$8 sps:$4 sm:$0xff]   ;;  %v1751_v46 = vld [vmem:[%s1961_s13 + $0x70] ss:$8 sps:$4 sm:$0xff]  }
  0x43   : > { %v1752_v47 = vld [vmem:[%s1961_s13 + $0xf0] ss:$8 sps:$4 sm:$0xff]   ;;  %326 = vst.msk [vmem:[#allocation2 + $0x30] sm:$0xff] %vm319_vm0, %v1838_v48  ;;  %327 = vst.msk [vmem:[#allocation2 + $0x38] sm:$0xff] %vm319_vm0, %v1838_v48  ;;  %v352_v51 = vld [vmem:[#allocation2] sm:$0xff]  ;;  %s1383_s13 = sshll.u32 %s1825_s18, 5 }
  0x44   : > { %328 = vst.msk [vmem:[#allocation2 + $0x40] sm:$0xff] %vm319_vm0, %v1838_v48  ;;  %329 = vst.msk [vmem:[#allocation2 + $0x48] sm:$0xff] %vm319_vm0, %v1838_v48  ;;  %v353_v59 = vld [vmem:[#allocation2 + $0x8] sm:$0xff]  ;;  %p2082_p7 = scmp.lt.s32.totalorder %s1383_s13, 63  ;;  %v354_v7 = vld [vmem:[#allocation2 + $0x10] sm:$0xff] }
  0x45   : > { %1512 = vmatpush3.bf16.msra.mxu0 %v1698_v9  ;;  %1627 = vmatpush3.bf16.msra.mxu1 %v1698_v9  ;;  %330 = vst.msk [vmem:[#allocation2 + $0x50] sm:$0xff] %vm319_vm0, %v1838_v48  ;;  %331 = vst.msk [vmem:[#allocation2 + $0x58] sm:$0xff] %vm319_vm0, %v1838_v48 }
  0x46   : > { %1513 = vmatprep.subr.bf16.mxu0 %v1699_v10  ;;  %1620 = vmatprep.subr.bf16.mxu1 %v1699_v10  ;;  %332 = vst.msk [vmem:[#allocation2 + $0x60] sm:$0xff] %vm319_vm0, %v1838_v48  ;;  %333 = vst.msk [vmem:[#allocation2 + $0x68] sm:$0xff] %vm319_vm0, %v1838_v48  ;;  %s2299_s13 = smov (!%p2082_p7, %s1383_s13), 63 }
  0x47   : > { %334 = vst.msk [vmem:[#allocation2 + $0x70] sm:$0xff] %vm319_vm0, %v1838_v48  ;;  %335 = vst.msk [vmem:[#allocation2 + $0x78] sm:$0xff] %vm319_vm0, %v1838_v48  ;;  %s1384_s14 = sshll.u32 %s2299_s13, 2 }
  0x48   : > { %336 = vst.msk [vmem:[#allocation2 + $0x80] sm:$0xff] %vm319_vm0, %v1838_v48  ;;  %337 = vst.msk [vmem:[#allocation2 + $0x88] sm:$0xff] %vm319_vm0, %v1838_v48  ;;  %s2118_s9 = scalar_lea.vmem %s2286_s4, %s1384_s14 }
  0x49   : > { %1514 = vmatpush3.bf16.msra.mxu0 %v1700_v13  ;;  %1628 = vmatpush3.bf16.msra.mxu1 %v1700_v13  ;;  %338 = vst.msk [vmem:[#allocation2 + $0x90] sm:$0xff] %vm319_vm0, %v1838_v48  ;;  %339 = vst.msk [vmem:[#allocation2 + $0x98] sm:$0xff] %vm319_vm0, %v1838_v48 }
  0x4a   : > { %1515 = vmatprep.subr.bf16.mxu0 %v1701_v14  ;;  %1621 = vmatprep.subr.bf16.mxu1 %v1701_v14  ;;  %340 = vst.msk [vmem:[#allocation2 + $0xa0] sm:$0xff] %vm319_vm0, %v1838_v48  ;;  %341 = vst.msk [vmem:[#allocation2 + $0xa8] sm:$0xff] %vm319_vm0, %v1838_v48 }
  0x4b   : > { %342 = vst.msk [vmem:[#allocation2 + $0xb0] sm:$0xff] %vm319_vm0, %v1838_v48  ;;  %343 = vst.msk [vmem:[#allocation2 + $0xb8] sm:$0xff] %vm319_vm0, %v1838_v48 }
  0x4c   : > { %344 = vst.msk [vmem:[#allocation2 + $0xc0] sm:$0xff] %vm319_vm0, %v1838_v48  ;;  %345 = vst.msk [vmem:[#allocation2 + $0xc8] sm:$0xff] %vm319_vm0, %v1838_v48 }
  0x4d   : > { %1516 = vmatpush3.bf16.msra.mxu0 %v1702_v15  ;;  %1629 = vmatpush3.bf16.msra.mxu1 %v1702_v15  ;;  %346 = vst.msk [vmem:[#allocation2 + $0xd0] sm:$0xff] %vm319_vm0, %v1838_v48  ;;  %347 = vst.msk [vmem:[#allocation2 + $0xd8] sm:$0xff] %vm319_vm0, %v1838_v48  ;;  %v2091_v15 = vld [vmem:[%s2284_s2] ss:$0 sm:$0xff] }
  0x4e   : > { %1517 = vmatprep.subr.bf16.mxu0 %v1703_v16  ;;  %1622 = vmatprep.subr.bf16.mxu1 %v1703_v16  ;;  %348 = vst.msk [vmem:[#allocation2 + $0xe0] sm:$0xff] %vm319_vm0, %v1838_v48  ;;  %349 = vst.msk [vmem:[#allocation2 + $0xe8] sm:$0xff] %vm319_vm0, %v1838_v48  ;;  %v355_v16 = vld [vmem:[#allocation2 + $0x18] sm:$0xff] }
  0x4f   : > { %350 = vst.msk [vmem:[#allocation2 + $0xf0] sm:$0xff] %vm319_vm0, %v1838_v48  ;;  %351 = vst.msk [vmem:[#allocation2 + $0xf8] sm:$0xff] %vm319_vm0, %v1838_v48  ;;  %v368_v53 = vld [vmem:[#allocation2 + $0x80] sm:$0xff]  ;;  %v369_v61 = vld [vmem:[#allocation2 + $0x88] sm:$0xff] }
  0x50   : > { %v370_v9 = vld [vmem:[#allocation2 + $0x90] sm:$0xff] }
  0x51   : > { %1518 = vmatpush3.bf16.msra.mxu0 %v1704_v17  ;;  %1630 = vmatpush3.bf16.msra.mxu1 %v1704_v17 }
  0x54   : > { %737 = vmatmul.mubr.bf16.vlgmr.msra.gmra.mrb[0].mxu0 %v1705_v18  ;;  %801 = vmatmul.mubr.bf16.vlgmr.msra.gmra.mrb[0].mxu1 %v1708_v19  ;;  %v371_v18 = vld [vmem:[#allocation2 + $0x98] sm:$0xff] }
  0x55   : > { %744 = vmatprep.mubr.bf16.mxu0 %v1711_v20  ;;  %808 = vmatprep.mubr.bf16.mxu1 %v1713_v21 }
  0x5c   : > { %745 = vmatmul.mubr.bf16.gmra.mrb[4].mxu0 %v1715_v22  ;;  %809 = vmatmul.mubr.bf16.gmra.mrb[4].mxu1 %v1716_v23 }
  0x5d   : > { %752 = vmatprep.mubr.bf16.mxu0 %v1717_v24  ;;  %816 = vmatprep.mubr.bf16.mxu1 %v1719_v25  ;;  %v2100_v25 = vld [vmem:[%s2285_s3] ss:$0 sm:$0xff] }
  0x64   : > { %753 = vmatmul.mubr.bf16.gmra.mrb[8].mxu0 %v1721_v26  ;;  %817 = vmatmul.mubr.bf16.gmra.mrb[8].mxu1 %v1722_v27 }
  0x65   : > { %760 = vmatprep.mubr.bf16.mxu0 %v1723_v28  ;;  %824 = vmatprep.mubr.bf16.mxu1 %v1725_v29 }
  0x6c   : > { %761 = vmatmul.mubr.bf16.gmra.mrb[12].mxu0 %v1727_v30  ;;  %825 = vmatmul.mubr.bf16.gmra.mrb[12].mxu1 %v1728_v31 }
  0x6d   : > { %768 = vmatprep.mubr.bf16.mxu0 %v1729_v32  ;;  %832 = vmatprep.mubr.bf16.mxu1 %v1731_v33 }
  0x74   : > { %769 = vmatmul.mubr.bf16.gmra.mrb[16].mxu0 %v1733_v34  ;;  %833 = vmatmul.mubr.bf16.gmra.mrb[16].mxu1 %v1734_v35 }
  0x75   : > { %776 = vmatprep.mubr.bf16.mxu0 %v1735_v36  ;;  %840 = vmatprep.mubr.bf16.mxu1 %v1737_v37 }
  0x7c   : > { %777 = vmatmul.mubr.bf16.gmra.mrb[20].mxu0 %v1739_v38  ;;  %841 = vmatmul.mubr.bf16.gmra.mrb[20].mxu1 %v1740_v39 }
  0x7d   : > { %784 = vmatprep.mubr.bf16.mxu0 %v1741_v40  ;;  %848 = vmatprep.mubr.bf16.mxu1 %v1743_v41 }
  0x84   : > { %785 = vmatmul.mubr.bf16.gmra.mrb[24].mxu0 %v1745_v42  ;;  %849 = vmatmul.mubr.bf16.gmra.mrb[24].mxu1 %v1746_v43 }
  0x85   : > { %792 = vmatprep.mubr.bf16.mxu0 %v1747_v44  ;;  %856 = vmatprep.mubr.bf16.mxu1 %v1749_v45  ;;  %v356_v45 = vld [vmem:[#allocation2 + $0x20] sm:$0xff] }
  0x8c   : > { %793 = vmatmul.mubr.bf16.gmra.mrb[28].mxu0 %v1751_v46  ;;  %857 = vmatmul.mubr.bf16.gmra.mrb[28].mxu1 %v1752_v47  ;;  %v372_v46 = vld [vmem:[#allocation2 + $0xa0] sm:$0xff] }
 0x127   : > { %v1519_v49 = vpop.f32.mrb[0].mxu0  ;;  %v1567_v50 = vpop.f32.mrb[0].mxu1 }
 0x128   : > { %v1520_v52 = vpop.f32.mrb[1].mxu0  ;;  %v1568_v54 = vpop.f32.mrb[1].mxu1 }
 0x129   : > { %v1521_v55 = vadd.f32 %v1520_v52, %v1519_v49  ;;  %v1569_v56 = vadd.f32 %v1568_v54, %v1567_v50  ;;  %v1522_v57 = vpop.f32.mrb[2].mxu0  ;;  %v1570_v58 = vpop.f32.mrb[2].mxu1 }
 0x12a   : > { %v1523_v60 = vpop.f32.mrb[3].mxu0  ;;  %v1571_v62 = vpop.f32.mrb[3].mxu1 }
 0x12b   : > { %v865_v63 = vadd.f32 %v1521_v55, %v352_v51  ;;  %v881_v0 = vadd.f32 %v1569_v56, %v368_v53  ;;  %v1524_v1 = vadd.f32 %v1523_v60, %v1522_v57  ;;  %v1572_v2 = vadd.f32 %v1571_v62, %v1570_v58  ;;  %v357_v57 = vld [vmem:[#allocation2 + $0x28] sm:$0xff] }
 0x12c   : > { %v373_v58 = vld [vmem:[#allocation2 + $0xa8] sm:$0xff] }
 0x12d   : > { %898 = vst.msk [vmem:[#allocation2] sm:$0xff] %vm319_vm0, %v865_v63  ;;  %914 = vst.msk [vmem:[#allocation2 + $0x80] sm:$0xff] %vm319_vm0, %v881_v0  ;;  %v866_v3 = vadd.f32 %v1524_v1, %v353_v59  ;;  %v882_v4 = vadd.f32 %v1572_v2, %v369_v61 }
 0x12f   : > { %899 = vst.msk [vmem:[#allocation2 + $0x8] sm:$0xff] %vm319_vm0, %v866_v3  ;;  %915 = vst.msk [vmem:[#allocation2 + $0x88] sm:$0xff] %vm319_vm0, %v882_v4  ;;  %v1525_v5 = vpop.f32.mrb[4].mxu0  ;;  %v1573_v6 = vpop.f32.mrb[4].mxu1 }
 0x130   : > { %v1526_v8 = vpop.f32.mrb[5].mxu0  ;;  %v1574_v10 = vpop.f32.mrb[5].mxu1 }
 0x131   : > { %v1527_v11 = vadd.f32 %v1526_v8, %v1525_v5  ;;  %v1575_v12 = vadd.f32 %v1574_v10, %v1573_v6  ;;  %v1528_v13 = vpop.f32.mrb[6].mxu0  ;;  %v1576_v14 = vpop.f32.mrb[6].mxu1 }
 0x132   : > { %v1529_v17 = vpop.f32.mrb[7].mxu0  ;;  %v1577_v19 = vpop.f32.mrb[7].mxu1 }
 0x133   : > { %v867_v20 = vadd.f32 %v1527_v11, %v354_v7  ;;  %v883_v21 = vadd.f32 %v1575_v12, %v370_v9  ;;  %v1530_v22 = vadd.f32 %v1529_v17, %v1528_v13  ;;  %v1578_v23 = vadd.f32 %v1577_v19, %v1576_v14 }
 0x134   : > { %v933_v24 = vld [vmem:[#allocation2] sm:$0xff] }
 0x135   : > { %v949_v26 = vld [vmem:[#allocation2 + $0x80] sm:$0xff]  ;;  %v972_v27 = vmul.f32 %v2091_v15, %v933_v24  ;;  %900 = vst.msk [vmem:[#allocation2 + $0x10] sm:$0xff] %vm319_vm0, %v867_v20  ;;  %916 = vst.msk [vmem:[#allocation2 + $0x90] sm:$0xff] %vm319_vm0, %v883_v21  ;;  %v868_v29 = vadd.f32 %v1530_v22, %v355_v16  ;;  %v884_v30 = vadd.f32 %v1578_v23, %v371_v18  ;;  %v358_v22 = vld [vmem:[#allocation2 + $0x30] sm:$0xff] }
 0x136   : > { %v988_v28 = vmul.f32 %v2091_v15, %v949_v26  ;;  %v934_v31 = vld [vmem:[#allocation2 + $0x8] sm:$0xff]  ;;  %v374_v23 = vld [vmem:[#allocation2 + $0xb0] sm:$0xff] }
 0x137   : > { %v950_v32 = vld [vmem:[#allocation2 + $0x88] sm:$0xff]  ;;  %v1011_v33 = vadd.f32 %v2100_v25, %v972_v27  ;;  %v973_v35 = vmul.f32 %v2091_v15, %v934_v31  ;;  %901 = vst.msk [vmem:[#allocation2 + $0x18] sm:$0xff] %vm319_vm0, %v868_v29  ;;  %917 = vst.msk [vmem:[#allocation2 + $0x98] sm:$0xff] %vm319_vm0, %v884_v30  ;;  %v1531_v37 = vpop.f32.mrb[8].mxu0  ;;  %v1579_v38 = vpop.f32.mrb[8].mxu1 }
 0x138   : > { %v1027_v34 = vadd.f32 %v2100_v25, %v988_v28  ;;  %v989_v36 = vmul.f32 %v2091_v15, %v950_v32  ;;  %v1532_v39 = vpop.f32.mrb[9].mxu0  ;;  %v1580_v40 = vpop.f32.mrb[9].mxu1 }
 0x139   : > { %v1043_v41 = vmax.f32 %v1011_v33, 0.0  ;;  %v1012_v43 = vadd.f32 %v2100_v25, %v973_v35  ;;  %v1534_v47 = vpop.f32.mrb[10].mxu0  ;;  %v1582_v48 = vpop.f32.mrb[10].mxu1  ;;  %v1533_v49 = vadd.f32 %v1532_v39, %v1531_v37  ;;  %v1581_v50 = vadd.f32 %v1580_v40, %v1579_v38  ;;  %v359_v35 = vld [vmem:[#allocation2 + $0x38] sm:$0xff] }
 0x13a   : > { %v1059_v42 = vmax.f32 %v1027_v34, 0.0  ;;  %v1028_v44 = vadd.f32 %v2100_v25, %v989_v36  ;;  %v1535_v51 = vpop.f32.mrb[11].mxu0  ;;  %v1583_v52 = vpop.f32.mrb[11].mxu1  ;;  %v375_v36 = vld [vmem:[#allocation2 + $0xb8] sm:$0xff] }
 0x13b   : > { %v1471_v53 = vpack.c.bf16 %v1043_v41, %v1043_v41  ;;  %v1044_v55 = vmax.f32 %v1012_v43, 0.0  ;;  %v869_v61 = vadd.f32 %v1533_v49, %v356_v45  ;;  %v885_v62 = vadd.f32 %v1581_v50, %v372_v46 }
 0x13c   : > { %v1487_v54 = vpack.c.bf16 %v1059_v42, %v1059_v42  ;;  %v1060_v56 = vmax.f32 %v1028_v44, 0.0  ;;  %v935_v59 = vld [vmem:[#allocation2 + $0x10] sm:$0xff]  ;;  %v1536_v63 = vadd.f32 %v1535_v51, %v1534_v47  ;;  %v1584_v0 = vadd.f32 %v1583_v52, %v1582_v48 }
 0x13d   : > { %v951_v60 = vld [vmem:[#allocation2 + $0x90] sm:$0xff]  ;;  %1204 = vst.msk [vmem:[%s2118_s9] sm:$0xf] %vm1203_vm1, %v1471_v53  ;;  %v1472_v1 = vpack.c.bf16 %v1044_v55, %v1044_v55  ;;  %v974_v3 = vmul.f32 %v2091_v15, %v935_v59  ;;  %v376_v59 = vld [vmem:[#allocation2 + $0xc0] sm:$0xff] }
 0x13e   : > { %1220 = vst.msk [vmem:[%s2118_s9 + $0x40] sm:$0xf] %vm1203_vm1, %v1487_v54  ;;  %v1488_v2 = vpack.c.bf16 %v1060_v56, %v1060_v56  ;;  %v990_v4 = vmul.f32 %v2091_v15, %v951_v60  ;;  %v936_v5 = vld [vmem:[#allocation2 + $0x18] sm:$0xff]  ;;  %v870_v7 = vadd.f32 %v1536_v63, %v357_v57  ;;  %v886_v8 = vadd.f32 %v1584_v0, %v373_v58  ;;  %v360_v57 = vld [vmem:[#allocation2 + $0x40] sm:$0xff] }
 0x13f   : > { %v952_v6 = vld [vmem:[#allocation2 + $0x98] sm:$0xff]  ;;  %902 = vst.msk [vmem:[#allocation2 + $0x20] sm:$0xff] %vm319_vm0, %v869_v61  ;;  %918 = vst.msk [vmem:[#allocation2 + $0xa0] sm:$0xff] %vm319_vm0, %v885_v62  ;;  %v1013_v9 = vadd.f32 %v2100_v25, %v974_v3  ;;  %v975_v11 = vmul.f32 %v2091_v15, %v936_v5  ;;  %v1537_v13 = vpop.f32.mrb[12].mxu0  ;;  %v1585_v14 = vpop.f32.mrb[12].mxu1  ;;  %v361_v5 = vld [vmem:[#allocation2 + $0x48] sm:$0xff] }
 0x140   : > { %1205 = vst.msk [vmem:[%s2118_s9 + $0x4] sm:$0xf] %vm1203_vm1, %v1472_v1  ;;  %1221 = vst.msk [vmem:[%s2118_s9 + $0x44] sm:$0xf] %vm1203_vm1, %v1488_v2  ;;  %v1029_v10 = vadd.f32 %v2100_v25, %v990_v4  ;;  %v991_v12 = vmul.f32 %v2091_v15, %v952_v6  ;;  %v1538_v16 = vpop.f32.mrb[13].mxu0  ;;  %v1586_v17 = vpop.f32.mrb[13].mxu1 }
 0x141   : > { %903 = vst.msk [vmem:[#allocation2 + $0x28] sm:$0xff] %vm319_vm0, %v870_v7  ;;  %919 = vst.msk [vmem:[#allocation2 + $0xa8] sm:$0xff] %vm319_vm0, %v886_v8  ;;  %v1045_v18 = vmax.f32 %v1013_v9, 0.0  ;;  %v1014_v20 = vadd.f32 %v2100_v25, %v975_v11  ;;  %v1540_v24 = vpop.f32.mrb[14].mxu0  ;;  %v1588_v26 = vpop.f32.mrb[14].mxu1  ;;  %v1539_v27 = vadd.f32 %v1538_v16, %v1537_v13  ;;  %v1587_v28 = vadd.f32 %v1586_v17, %v1585_v14  ;;  %v377_v7 = vld [vmem:[#allocation2 + $0xc8] sm:$0xff] }
 0x142   : > { %v1061_v19 = vmax.f32 %v1029_v10, 0.0  ;;  %v1030_v21 = vadd.f32 %v2100_v25, %v991_v12  ;;  %v1541_v29 = vpop.f32.mrb[15].mxu0  ;;  %v1589_v30 = vpop.f32.mrb[15].mxu1 }
 0x143   : > { %v1473_v31 = vpack.c.bf16 %v1045_v18, %v1045_v18  ;;  %v1046_v33 = vmax.f32 %v1014_v20, 0.0  ;;  %v871_v37 = vadd.f32 %v1539_v27, %v358_v22  ;;  %v887_v38 = vadd.f32 %v1587_v28, %v374_v23 }
 0x144   : > { %v1489_v32 = vpack.c.bf16 %v1061_v19, %v1061_v19  ;;  %v1062_v34 = vmax.f32 %v1030_v21, 0.0  ;;  %v1542_v39 = vadd.f32 %v1541_v29, %v1540_v24  ;;  %v1590_v40 = vadd.f32 %v1589_v30, %v1588_v26 }
 0x145   : > { %1206 = vst.msk [vmem:[%s2118_s9 + $0x8] sm:$0xf] %vm1203_vm1, %v1473_v31  ;;  %v1474_v41 = vpack.c.bf16 %v1046_v33, %v1046_v33 }
 0x146   : > { %1222 = vst.msk [vmem:[%s2118_s9 + $0x48] sm:$0xf] %vm1203_vm1, %v1489_v32  ;;  %v1490_v42 = vpack.c.bf16 %v1062_v34, %v1062_v34  ;;  %v937_v43 = vld [vmem:[#allocation2 + $0x20] sm:$0xff]  ;;  %v872_v47 = vadd.f32 %v1542_v39, %v359_v35  ;;  %v888_v48 = vadd.f32 %v1590_v40, %v375_v36  ;;  %v362_v35 = vld [vmem:[#allocation2 + $0x50] sm:$0xff] }
 0x147   : > { %v953_v44 = vld [vmem:[#allocation2 + $0xa0] sm:$0xff]  ;;  %v976_v45 = vmul.f32 %v2091_v15, %v937_v43  ;;  %904 = vst.msk [vmem:[#allocation2 + $0x30] sm:$0xff] %vm319_vm0, %v871_v37  ;;  %920 = vst.msk [vmem:[#allocation2 + $0xb0] sm:$0xff] %vm319_vm0, %v887_v38  ;;  %v1543_v51 = vpop.f32.mrb[16].mxu0  ;;  %v1591_v52 = vpop.f32.mrb[16].mxu1  ;;  %v378_v37 = vld [vmem:[#allocation2 + $0xd0] sm:$0xff] }
 0x148   : > { %v992_v46 = vmul.f32 %v2091_v15, %v953_v44  ;;  %1207 = vst.msk [vmem:[%s2118_s9 + $0xc] sm:$0xf] %vm1203_vm1, %v1474_v41  ;;  %1223 = vst.msk [vmem:[%s2118_s9 + $0x4c] sm:$0xf] %vm1203_vm1, %v1490_v42  ;;  %v938_v49 = vld [vmem:[#allocation2 + $0x28] sm:$0xff]  ;;  %v1544_v58 = vpop.f32.mrb[17].mxu0 }
 0x149   : > { %v954_v50 = vld [vmem:[#allocation2 + $0xa8] sm:$0xff]  ;;  %v1015_v53 = vadd.f32 %v2100_v25, %v976_v45  ;;  %v977_v55 = vmul.f32 %v2091_v15, %v938_v49  ;;  %905 = vst.msk [vmem:[#allocation2 + $0x38] sm:$0xff] %vm319_vm0, %v872_v47  ;;  %921 = vst.msk [vmem:[#allocation2 + $0xb8] sm:$0xff] %vm319_vm0, %v888_v48  ;;  %v1592_v60 = vpop.f32.mrb[17].mxu1  ;;  %v1545_v61 = vadd.f32 %v1544_v58, %v1543_v51  ;;  %v1546_v63 = vpop.f32.mrb[18].mxu0  ;;  %v363_v47 = vld [vmem:[#allocation2 + $0x58] sm:$0xff] }
 0x14a   : > { %v1031_v54 = vadd.f32 %v2100_v25, %v992_v46  ;;  %v993_v56 = vmul.f32 %v2091_v15, %v954_v50  ;;  %v1593_v62 = vadd.f32 %v1592_v60, %v1591_v52  ;;  %v1594_v0 = vpop.f32.mrb[18].mxu1  ;;  %v1547_v6 = vpop.f32.mrb[19].mxu0  ;;  %v379_v49 = vld [vmem:[#allocation2 + $0xd8] sm:$0xff] }
 0x14b   : > { %v1047_v1 = vmax.f32 %v1015_v53, 0.0  ;;  %v1016_v3 = vadd.f32 %v2100_v25, %v977_v55  ;;  %v1595_v8 = vpop.f32.mrb[19].mxu1  ;;  %v873_v9 = vadd.f32 %v1545_v61, %v360_v57  ;;  %v1548_v11 = vadd.f32 %v1547_v6, %v1546_v63 }
 0x14c   : > { %v1063_v2 = vmax.f32 %v1031_v54, 0.0  ;;  %v1032_v4 = vadd.f32 %v2100_v25, %v993_v56  ;;  %v889_v10 = vadd.f32 %v1593_v62, %v376_v59  ;;  %v1596_v12 = vadd.f32 %v1595_v8, %v1594_v0 }
 0x14d   : > { %v1475_v13 = vpack.c.bf16 %v1047_v1, %v1047_v1  ;;  %v1048_v16 = vmax.f32 %v1016_v3, 0.0  ;;  %906 = vst.msk [vmem:[#allocation2 + $0x40] sm:$0xff] %vm319_vm0, %v873_v9  ;;  %v874_v20 = vadd.f32 %v1548_v11, %v361_v5 }
 0x14e   : > { %v1491_v14 = vpack.c.bf16 %v1063_v2, %v1063_v2  ;;  %v1064_v17 = vmax.f32 %v1032_v4, 0.0  ;;  %v939_v18 = vld [vmem:[#allocation2 + $0x30] sm:$0xff]  ;;  %922 = vst.msk [vmem:[#allocation2 + $0xc0] sm:$0xff] %vm319_vm0, %v889_v10  ;;  %v890_v21 = vadd.f32 %v1596_v12, %v377_v7 }
 0x14f   : > { %v955_v19 = vld [vmem:[#allocation2 + $0xb0] sm:$0xff]  ;;  %1208 = vst.msk [vmem:[%s2118_s9 + $0x10] sm:$0xf] %vm1203_vm1, %v1475_v13  ;;  %v1476_v22 = vpack.c.bf16 %v1048_v16, %v1048_v16  ;;  %v978_v24 = vmul.f32 %v2091_v15, %v939_v18  ;;  %v1549_v29 = vpop.f32.mrb[20].mxu0  ;;  %v1597_v30 = vpop.f32.mrb[20].mxu1  ;;  %v364_v18 = vld [vmem:[#allocation2 + $0x60] sm:$0xff] }
 0x150   : > { %1224 = vst.msk [vmem:[%s2118_s9 + $0x50] sm:$0xf] %vm1203_vm1, %v1491_v14  ;;  %v1492_v23 = vpack.c.bf16 %v1064_v17, %v1064_v17  ;;  %v994_v26 = vmul.f32 %v2091_v15, %v955_v19  ;;  %v940_v27 = vld [vmem:[#allocation2 + $0x38] sm:$0xff]  ;;  %v1550_v36 = vpop.f32.mrb[21].mxu0  ;;  %v1598_v38 = vpop.f32.mrb[21].mxu1  ;;  %v380_v19 = vld [vmem:[#allocation2 + $0xe0] sm:$0xff] }
 0x151   : > { %v956_v28 = vld [vmem:[#allocation2 + $0xb8] sm:$0xff]  ;;  %907 = vst.msk [vmem:[#allocation2 + $0x48] sm:$0xff] %vm319_vm0, %v874_v20  ;;  %923 = vst.msk [vmem:[#allocation2 + $0xc8] sm:$0xff] %vm319_vm0, %v890_v21  ;;  %v1017_v31 = vadd.f32 %v2100_v25, %v978_v24  ;;  %v979_v33 = vmul.f32 %v2091_v15, %v940_v27  ;;  %v1551_v39 = vadd.f32 %v1550_v36, %v1549_v29  ;;  %v1552_v41 = vpop.f32.mrb[22].mxu0  ;;  %v1600_v42 = vpop.f32.mrb[22].mxu1 }
 0x152   : > { %1209 = vst.msk [vmem:[%s2118_s9 + $0x14] sm:$0xf] %vm1203_vm1, %v1476_v22  ;;  %1225 = vst.msk [vmem:[%s2118_s9 + $0x54] sm:$0xf] %vm1203_vm1, %v1492_v23  ;;  %v1033_v32 = vadd.f32 %v2100_v25, %v994_v26  ;;  %v995_v34 = vmul.f32 %v2091_v15, %v956_v28  ;;  %v1599_v40 = vadd.f32 %v1598_v38, %v1597_v30  ;;  %v1553_v48 = vpop.f32.mrb[23].mxu0  ;;  %v1601_v50 = vpop.f32.mrb[23].mxu1 }
 0x153   : > { %v1049_v43 = vmax.f32 %v1017_v31, 0.0  ;;  %v1018_v45 = vadd.f32 %v2100_v25, %v979_v33  ;;  %v875_v51 = vadd.f32 %v1551_v39, %v362_v35  ;;  %v1554_v53 = vadd.f32 %v1553_v48, %v1552_v41  ;;  %v365_v31 = vld [vmem:[#allocation2 + $0x68] sm:$0xff] }
 0x154   : > { %v1065_v44 = vmax.f32 %v1033_v32, 0.0  ;;  %v1034_v46 = vadd.f32 %v2100_v25, %v995_v34  ;;  %v891_v52 = vadd.f32 %v1599_v40, %v378_v37  ;;  %v1602_v54 = vadd.f32 %v1601_v50, %v1600_v42  ;;  %v941_v59 = vld [vmem:[#allocation2 + $0x40] sm:$0xff]  ;;  %v381_v32 = vld [vmem:[#allocation2 + $0xe8] sm:$0xff] }
 0x155   : > { %v1477_v55 = vpack.c.bf16 %v1049_v43, %v1049_v43  ;;  %v1050_v57 = vmax.f32 %v1018_v45, 0.0  ;;  %v957_v60 = vld [vmem:[#allocation2 + $0xc0] sm:$0xff]  ;;  %v980_v61 = vmul.f32 %v2091_v15, %v941_v59  ;;  %908 = vst.msk [vmem:[#allocation2 + $0x50] sm:$0xff] %vm319_vm0, %v875_v51  ;;  %v876_v63 = vadd.f32 %v1554_v53, %v363_v47  ;;  %v366_v59 = vld [vmem:[#allocation2 + $0x70] sm:$0xff] }
 0x156   : > { %v1493_v56 = vpack.c.bf16 %v1065_v44, %v1065_v44  ;;  %v1066_v58 = vmax.f32 %v1034_v46, 0.0  ;;  %v996_v62 = vmul.f32 %v2091_v15, %v957_v60  ;;  %924 = vst.msk [vmem:[#allocation2 + $0xd0] sm:$0xff] %vm319_vm0, %v891_v52  ;;  %v892_v0 = vadd.f32 %v1602_v54, %v379_v49  ;;  %v382_v60 = vld [vmem:[#allocation2 + $0xf0] sm:$0xff] }
 0x157   : > { %1210 = vst.msk [vmem:[%s2118_s9 + $0x18] sm:$0xf] %vm1203_vm1, %v1477_v55  ;;  %v1478_v1 = vpack.c.bf16 %v1050_v57, %v1050_v57  ;;  %v1019_v5 = vadd.f32 %v2100_v25, %v980_v61  ;;  %v1555_v9 = vpop.f32.mrb[24].mxu0  ;;  %v1603_v10 = vpop.f32.mrb[24].mxu1 }
 0x158   : > { %1226 = vst.msk [vmem:[%s2118_s9 + $0x58] sm:$0xf] %vm1203_vm1, %v1493_v56  ;;  %v1494_v2 = vpack.c.bf16 %v1066_v58, %v1066_v58  ;;  %v942_v3 = vld [vmem:[#allocation2 + $0x48] sm:$0xff]  ;;  %v1035_v6 = vadd.f32 %v2100_v25, %v996_v62  ;;  %v1556_v11 = vpop.f32.mrb[25].mxu0  ;;  %v1604_v12 = vpop.f32.mrb[25].mxu1 }
 0x159   : > { %v958_v4 = vld [vmem:[#allocation2 + $0xc8] sm:$0xff]  ;;  %v981_v7 = vmul.f32 %v2091_v15, %v942_v3  ;;  %909 = vst.msk [vmem:[#allocation2 + $0x58] sm:$0xff] %vm319_vm0, %v876_v63  ;;  %925 = vst.msk [vmem:[#allocation2 + $0xd8] sm:$0xff] %vm319_vm0, %v892_v0  ;;  %v1051_v13 = vmax.f32 %v1019_v5, 0.0  ;;  %v1558_v20 = vpop.f32.mrb[26].mxu0  ;;  %v1606_v21 = vpop.f32.mrb[26].mxu1  ;;  %v1557_v22 = vadd.f32 %v1556_v11, %v1555_v9  ;;  %v1605_v23 = vadd.f32 %v1604_v12, %v1603_v10 }
 0x15a   : > { %v997_v8 = vmul.f32 %v2091_v15, %v958_v4  ;;  %1211 = vst.msk [vmem:[%s2118_s9 + $0x1c] sm:$0xf] %vm1203_vm1, %v1478_v1  ;;  %1227 = vst.msk [vmem:[%s2118_s9 + $0x5c] sm:$0xf] %vm1203_vm1, %v1494_v2  ;;  %v1067_v14 = vmax.f32 %v1035_v6, 0.0  ;;  %v1559_v24 = vpop.f32.mrb[27].mxu0 }
 0x15b   : > { %v1020_v16 = vadd.f32 %v2100_v25, %v981_v7  ;;  %v1607_v26 = vpop.f32.mrb[27].mxu1  ;;  %v1479_v27 = vpack.c.bf16 %v1051_v13, %v1051_v13  ;;  %v877_v35 = vadd.f32 %v1557_v22, %v364_v18  ;;  %v893_v36 = vadd.f32 %v1605_v23, %v380_v19  ;;  %v367_v7 = vld [vmem:[#allocation2 + $0x78] sm:$0xff] }
 0x15c   : > { %v1036_v17 = vadd.f32 %v2100_v25, %v997_v8  ;;  %v1495_v28 = vpack.c.bf16 %v1067_v14, %v1067_v14  ;;  %v943_v33 = vld [vmem:[#allocation2 + $0x50] sm:$0xff]  ;;  %v1560_v37 = vadd.f32 %v1559_v24, %v1558_v20  ;;  %v1608_v38 = vadd.f32 %v1607_v26, %v1606_v21  ;;  %v383_v8 = vld [vmem:[#allocation2 + $0xf8] sm:$0xff] }
 0x15d   : > { %v1052_v29 = vmax.f32 %v1020_v16, 0.0  ;;  %v959_v34 = vld [vmem:[#allocation2 + $0xd0] sm:$0xff]  ;;  %1212 = vst.msk [vmem:[%s2118_s9 + $0x20] sm:$0xf] %vm1203_vm1, %v1479_v27  ;;  %v982_v41 = vmul.f32 %v2091_v15, %v943_v33 }
 0x15e   : > { %v1068_v30 = vmax.f32 %v1036_v17, 0.0  ;;  %1228 = vst.msk [vmem:[%s2118_s9 + $0x60] sm:$0xf] %vm1203_vm1, %v1495_v28  ;;  %v998_v42 = vmul.f32 %v2091_v15, %v959_v34  ;;  %v878_v45 = vadd.f32 %v1560_v37, %v365_v31  ;;  %v894_v46 = vadd.f32 %v1608_v38, %v381_v32 }
 0x15f   : > { %v1480_v39 = vpack.c.bf16 %v1052_v29, %v1052_v29  ;;  %910 = vst.msk [vmem:[#allocation2 + $0x60] sm:$0xff] %vm319_vm0, %v877_v35  ;;  %926 = vst.msk [vmem:[#allocation2 + $0xe0] sm:$0xff] %vm319_vm0, %v893_v36  ;;  %v1021_v47 = vadd.f32 %v2100_v25, %v982_v41  ;;  %v1561_v51 = vpop.f32.mrb[28].mxu0  ;;  %v1609_v52 = vpop.f32.mrb[28].mxu1 }
 0x160   : > { %v1496_v40 = vpack.c.bf16 %v1068_v30, %v1068_v30  ;;  %v944_v43 = vld [vmem:[#allocation2 + $0x58] sm:$0xff]  ;;  %v1037_v48 = vadd.f32 %v2100_v25, %v998_v42  ;;  %911 = vst.msk [vmem:[#allocation2 + $0x68] sm:$0xff] %vm319_vm0, %v878_v45  ;;  %927 = vst.msk [vmem:[#allocation2 + $0xe8] sm:$0xff] %vm319_vm0, %v894_v46  ;;  %v1562_v53 = vpop.f32.mrb[29].mxu0  ;;  %v1610_v54 = vpop.f32.mrb[29].mxu1 }
 0x161   : > { %v960_v44 = vld [vmem:[#allocation2 + $0xd8] sm:$0xff]  ;;  %1213 = vst.msk [vmem:[%s2118_s9 + $0x24] sm:$0xf] %vm1203_vm1, %v1480_v39  ;;  %v983_v49 = vmul.f32 %v2091_v15, %v944_v43  ;;  %v1053_v55 = vmax.f32 %v1021_v47, 0.0  ;;  %v1564_v61 = vpop.f32.mrb[30].mxu0  ;;  %v1612_v62 = vpop.f32.mrb[30].mxu1  ;;  %v1563_v63 = vadd.f32 %v1562_v53, %v1561_v51  ;;  %v1611_v0 = vadd.f32 %v1610_v54, %v1609_v52 }
 0x162   : > { %1229 = vst.msk [vmem:[%s2118_s9 + $0x64] sm:$0xf] %vm1203_vm1, %v1496_v40  ;;  %v999_v50 = vmul.f32 %v2091_v15, %v960_v44  ;;  %v1069_v56 = vmax.f32 %v1037_v48, 0.0  ;;  %v1565_v1 = vpop.f32.mrb[31].mxu0  ;;  %v1613_v2 = vpop.f32.mrb[31].mxu1 }
 0x163   : > { %v1022_v57 = vadd.f32 %v2100_v25, %v983_v49  ;;  %v1481_v3 = vpack.c.bf16 %v1053_v55, %v1053_v55  ;;  %v879_v9 = vadd.f32 %v1563_v63, %v366_v59  ;;  %v895_v10 = vadd.f32 %v1611_v0, %v382_v60 }
 0x164   : > { %v1038_v58 = vadd.f32 %v2100_v25, %v999_v50  ;;  %v1497_v4 = vpack.c.bf16 %v1069_v56, %v1069_v56  ;;  %v1566_v11 = vadd.f32 %v1565_v1, %v1564_v61  ;;  %v1614_v12 = vadd.f32 %v1613_v2, %v1612_v62 }
 0x165   : > { %v1054_v5 = vmax.f32 %v1022_v57, 0.0  ;;  %1214 = vst.msk [vmem:[%s2118_s9 + $0x28] sm:$0xf] %vm1203_vm1, %v1481_v3 }
 0x166   : > { %v1070_v6 = vmax.f32 %v1038_v58, 0.0  ;;  %1230 = vst.msk [vmem:[%s2118_s9 + $0x68] sm:$0xf] %vm1203_vm1, %v1497_v4  ;;  %v945_v16 = vld [vmem:[#allocation2 + $0x60] sm:$0xff]  ;;  %v880_v20 = vadd.f32 %v1566_v11, %v367_v7  ;;  %v896_v21 = vadd.f32 %v1614_v12, %v383_v8 }
 0x167   : > { %v1482_v13 = vpack.c.bf16 %v1054_v5, %v1054_v5  ;;  %v961_v17 = vld [vmem:[#allocation2 + $0xe0] sm:$0xff]  ;;  %v984_v18 = vmul.f32 %v2091_v15, %v945_v16  ;;  %912 = vst.msk [vmem:[#allocation2 + $0x70] sm:$0xff] %vm319_vm0, %v879_v9  ;;  %928 = vst.msk [vmem:[#allocation2 + $0xf0] sm:$0xff] %vm319_vm0, %v895_v10  ;;  %v946_v22 = vld [vmem:[#allocation2 + $0x68] sm:$0xff] }
 0x168   : > { %v1498_v14 = vpack.c.bf16 %v1070_v6, %v1070_v6  ;;  %v1000_v19 = vmul.f32 %v2091_v15, %v961_v17  ;;  %v962_v23 = vld [vmem:[#allocation2 + $0xe8] sm:$0xff]  ;;  %v985_v27 = vmul.f32 %v2091_v15, %v946_v22  ;;  %913 = vst.msk [vmem:[#allocation2 + $0x78] sm:$0xff] %vm319_vm0, %v880_v20  ;;  %929 = vst.msk [vmem:[#allocation2 + $0xf8] sm:$0xff] %vm319_vm0, %v896_v21 }
 0x169   : > { %1215 = vst.msk [vmem:[%s2118_s9 + $0x2c] sm:$0xf] %vm1203_vm1, %v1482_v13  ;;  %v1023_v24 = vadd.f32 %v2100_v25, %v984_v18  ;;  %v1001_v28 = vmul.f32 %v2091_v15, %v962_v23 }
 0x16a   : > { %1231 = vst.msk [vmem:[%s2118_s9 + $0x6c] sm:$0xf] %vm1203_vm1, %v1498_v14  ;;  %v1039_v26 = vadd.f32 %v2100_v25, %v1000_v19  ;;  %v1024_v31 = vadd.f32 %v2100_v25, %v985_v27 }
 0x16b   : > { %v1055_v29 = vmax.f32 %v1023_v24, 0.0  ;;  %v1040_v32 = vadd.f32 %v2100_v25, %v1001_v28 }
 0x16c   : > { %v1071_v30 = vmax.f32 %v1039_v26, 0.0  ;;  %v1056_v35 = vmax.f32 %v1024_v31, 0.0 }
 0x16d   : > { %v1483_v33 = vpack.c.bf16 %v1055_v29, %v1055_v29  ;;  %v1072_v36 = vmax.f32 %v1040_v32, 0.0 }
 0x16e   : > { %v1499_v34 = vpack.c.bf16 %v1071_v30, %v1071_v30  ;;  %v947_v37 = vld [vmem:[#allocation2 + $0x70] sm:$0xff]  ;;  %v1484_v39 = vpack.c.bf16 %v1056_v35, %v1056_v35 }
 0x16f   : > { %v963_v38 = vld [vmem:[#allocation2 + $0xf0] sm:$0xff]  ;;  %1216 = vst.msk [vmem:[%s2118_s9 + $0x30] sm:$0xf] %vm1203_vm1, %v1483_v33  ;;  %v1500_v40 = vpack.c.bf16 %v1072_v36, %v1072_v36  ;;  %v986_v41 = vmul.f32 %v2091_v15, %v947_v37  ;;  %v948_v43 = vld [vmem:[#allocation2 + $0x78] sm:$0xff] }
 0x170   : > { %1232 = vst.msk [vmem:[%s2118_s9 + $0x70] sm:$0xf] %vm1203_vm1, %v1499_v34  ;;  %v1002_v42 = vmul.f32 %v2091_v15, %v963_v38  ;;  %v964_v44 = vld [vmem:[#allocation2 + $0xf8] sm:$0xff]  ;;  %1217 = vst.msk [vmem:[%s2118_s9 + $0x34] sm:$0xf] %vm1203_vm1, %v1484_v39  ;;  %v987_v47 = vmul.f32 %v2091_v15, %v948_v43 }
 0x171   : > { %1233 = vst.msk [vmem:[%s2118_s9 + $0x74] sm:$0xf] %vm1203_vm1, %v1500_v40  ;;  %v1025_v45 = vadd.f32 %v2100_v25, %v986_v41  ;;  %v1003_v48 = vmul.f32 %v2091_v15, %v964_v44 }
 0x172   : > { %v1041_v46 = vadd.f32 %v2100_v25, %v1002_v42  ;;  %v1026_v51 = vadd.f32 %v2100_v25, %v987_v47 }
 0x173   : > { %v1057_v49 = vmax.f32 %v1025_v45, 0.0  ;;  %v1042_v52 = vadd.f32 %v2100_v25, %v1003_v48 }
 0x174   : > { %v1073_v50 = vmax.f32 %v1041_v46, 0.0  ;;  %v1058_v55 = vmax.f32 %v1026_v51, 0.0 }
 0x175   : > { %v1485_v53 = vpack.c.bf16 %v1057_v49, %v1057_v49  ;;  %v1074_v56 = vmax.f32 %v1042_v52, 0.0 }
 0x176   : > { %v1501_v54 = vpack.c.bf16 %v1073_v50, %v1073_v50  ;;  %v1486_v57 = vpack.c.bf16 %v1058_v55, %v1058_v55 }
 0x177   : > { %1218 = vst.msk [vmem:[%s2118_s9 + $0x38] sm:$0xf] %vm1203_vm1, %v1485_v53  ;;  %v1502_v58 = vpack.c.bf16 %v1074_v56, %v1074_v56 }
 0x178   : > { %1234 = vst.msk [vmem:[%s2118_s9 + $0x78] sm:$0xf] %vm1203_vm1, %v1501_v54  ;;  %1219 = vst.msk [vmem:[%s2118_s9 + $0x3c] sm:$0xf] %vm1203_vm1, %v1486_v57 }
 0x179   : > { %1235 = vst.msk [vmem:[%s2118_s9 + $0x7c] sm:$0xf] %vm1203_vm1, %v1502_v58 }
 0x17a PF: > { %s17_s20 = sadd.s32 1, %s1833_s20   ;;  %s2291_s15 = smov %s1817_s16 }
 0x17b   : > { %p14_p9 = scmp.ge.s32.totalorder %s17_s20, 4   ;;  %s2292_s16 = smov %s1821_s17 }
 0x17c   : > { %s2293_s17 = smov %s1913_s27  ;;  %s2294_s18 = smov %s1829_s19 }
 0x17d   : > { %s2295_s19 = smov %s2297_s22  ;;  %16 = sbr.rel (!%p14_p9) target bundleno = 4 (0x4), region = 93 }
 0x184   :  { %1264 = vsyncpa [#allocation4], 1 }
 0x185   :  { %1266 = vsyncpa [#allocation4 + $0x1], 1 }

</bundles_post_ra>
